<compile_context>
chip_gen: v7x
topology: tpu7x:2x2x1
jax: 0.10.0
libtpu: 0.0.40
codegen_flags: <defaults>
</compile_context>

<pallas_src>
import math
import jax
import jax.numpy as jnp
from jax.experimental import pallas as pl
from jax.experimental.pallas import tpu as pltpu


# ----------------------------- tiling helpers ------------------------------

_ROW_TILE = 512      # rows per grid step for position-independent kernels (mult of 8)
_T_BLK_MAX = 128     # timesteps per grid step in the LRU scan


def _pick_row_tile(m):
    return m if m <= _ROW_TILE else _ROW_TILE


def _pick_time_block(L):
    if L <= _T_BLK_MAX:
        return L
    for cand in range(_T_BLK_MAX, 0, -1):
        if L % cand == 0:
            return cand
    return 1


# ----------------------------- Pallas kernels ------------------------------

def _matmul_kernel(x_ref, w_ref, o_ref):
    o_ref[...] = jnp.dot(x_ref[...], w_ref[...], preferred_element_type=jnp.float32)


def _linear_kernel(x_ref, w_ref, b_ref, o_ref):
    o_ref[...] = (jnp.dot(x_ref[...], w_ref[...], preferred_element_type=jnp.float32)
                  + b_ref[...])


def matmul(x, w):
    m, k = x.shape
    n = w.shape[1]
    tm = _pick_row_tile(m)
    return pl.pallas_call(
        _matmul_kernel,
        out_shape=jax.ShapeDtypeStruct((m, n), jnp.float32),
        grid_spec=pltpu.PrefetchScalarGridSpec(
            num_scalar_prefetch=0,
            grid=(pl.cdiv(m, tm),),
            in_specs=[pl.BlockSpec((tm, k), lambda i: (i, 0)),
                      pl.BlockSpec((k, n), lambda i: (0, 0))],
            out_specs=pl.BlockSpec((tm, n), lambda i: (i, 0)),
        ),
        compiler_params=pltpu.CompilerParams(dimension_semantics=("parallel",)),
    )(x, w)


def linear(x, w, b):
    m, k = x.shape
    n = w.shape[1]
    tm = _pick_row_tile(m)
    return pl.pallas_call(
        _linear_kernel,
        out_shape=jax.ShapeDtypeStruct((m, n), jnp.float32),
        grid_spec=pltpu.PrefetchScalarGridSpec(
            num_scalar_prefetch=0,
            grid=(pl.cdiv(m, tm),),
            in_specs=[pl.BlockSpec((tm, k), lambda i: (i, 0)),
                      pl.BlockSpec((k, n), lambda i: (0, 0)),
                      pl.BlockSpec((1, n), lambda i: (0, 0))],
            out_specs=pl.BlockSpec((tm, n), lambda i: (i, 0)),
        ),
        compiler_params=pltpu.CompilerParams(dimension_semantics=("parallel",)),
    )(x, w, b)


def _lru_scan_kernel(bu_ref, lre_ref, lim_ref, s_ref, sre_sc, sim_sc):
    """Diagonal complex recurrence, T_blk timesteps per grid step.

    bu_ref : (T_blk, B, 2N)  precomputed input projection  [Re | Im]
    s_ref  : (T_blk, B, 2N)  states output                 [Re | Im]
    Complex state carried across grid steps in VMEM scratch (sre_sc, sim_sc).
    Only elementwise VPU work inside the serial loop (all matmuls hoisted).
    """
    @pl.when(pl.program_id(0) == 0)
    def _():
        sre_sc[...] = jnp.zeros_like(sre_sc)   # zero init (PyTorch LRU, state=None)
        sim_sc[...] = jnp.zeros_like(sim_sc)

    bb, n = sre_sc.shape
    t_blk = bu_ref.shape[0]

    # hoist the Λ broadcast out of the time loop (JAX does not CSE broadcasts)
    lr = jnp.broadcast_to(lre_ref[...], (bb, n))
    li = jnp.broadcast_to(lim_ref[...], (bb, n))

    def body(t, carry):
        sr, si = carry
        bu = bu_ref[t]                          # (B, 2N)
        nr = lr * sr - li * si + bu[:, :n]      # Re(Λ s + B x)
        ni = lr * si + li * sr + bu[:, n:]      # Im(Λ s + B x)
        s_ref[t] = jnp.concatenate([nr, ni], axis=-1)   # lane-dense (B, 2N) store
        return nr, ni

    sr_f, si_f = jax.lax.fori_loop(0, t_blk, body, (sre_sc[...], sim_sc[...]))
    sre_sc[...] = sr_f
    sim_sc[...] = si_f


def lru_scan(bu, lam_re, lam_im):
    L, bb, two_n = bu.shape
    n = two_n // 2
    t_blk = _pick_time_block(L)
    return pl.pallas_call(
        _lru_scan_kernel,
        out_shape=jax.ShapeDtypeStruct((L, bb, two_n), jnp.float32),
        grid_spec=pltpu.PrefetchScalarGridSpec(
            num_scalar_prefetch=0,
            grid=(L // t_blk,),
            in_specs=[pl.BlockSpec((t_blk, bb, two_n), lambda t: (t, 0, 0)),
                      pl.BlockSpec((1, n), lambda t: (0, 0)),
                      pl.BlockSpec((1, n), lambda t: (0, 0))],
            out_specs=pl.BlockSpec((t_blk, bb, two_n), lambda t: (t, 0, 0)),
            scratch_shapes=[pltpu.VMEM((bb, n), jnp.float32),    # state (re)
                            pltpu.VMEM((bb, n), jnp.float32)],   # state (im)
        ),
        compiler_params=pltpu.CompilerParams(dimension_semantics=("arbitrary",)),
    )(bu, lam_re, lam_im)


def _lru_out_glu_resid_kernel(s_ref, x_ref, cstack_ref, dt_ref,
                              wglu_ref, bglu_ref, o_ref):
    """Fused LRU readout + GLU feed-forward + residual, row-tiled."""
    x = x_ref[...]
    d = x.shape[-1]
    # z = Re(C s) + D x   (re/im fused into one wide MXU pass via cstack)
    z = (jnp.dot(s_ref[...], cstack_ref[...], preferred_element_type=jnp.float32)
         + jnp.dot(x, dt_ref[...], preferred_element_type=jnp.float32))
    # TODO(synk): torch.nn.GELU default is exact (erf) GELU; tanh approximation
    # is used since erf has no guaranteed Mosaic lowering (difference ~1e-3).
    h = jax.nn.gelu(z, approximate=True)
    g = jnp.dot(h, wglu_ref[...], preferred_element_type=jnp.float32) + bglu_ref[...]
    o_ref[...] = g[:, :d] * jax.nn.sigmoid(g[:, d:]) + x


def lru_out_glu_resid(s2, x2, cstack, dt, wglu, bglu):
    m, two_n = s2.shape
    d = x2.shape[1]
    tm = _pick_row_tile(m)
    return pl.pallas_call(
        _lru_out_glu_resid_kernel,
        out_shape=jax.ShapeDtypeStruct((m, d), jnp.float32),
        grid_spec=pltpu.PrefetchScalarGridSpec(
            num_scalar_prefetch=0,
            grid=(pl.cdiv(m, tm),),
            in_specs=[pl.BlockSpec((tm, two_n), lambda i: (i, 0)),
                      pl.BlockSpec((tm, d), lambda i: (i, 0)),
                      pl.BlockSpec((two_n, d), lambda i: (0, 0)),
                      pl.BlockSpec((d, d), lambda i: (0, 0)),
                      pl.BlockSpec((d, 2 * d), lambda i: (0, 0)),
                      pl.BlockSpec((1, 2 * d), lambda i: (0, 0))],
            out_specs=pl.BlockSpec((tm, d), lambda i: (i, 0)),
        ),
        compiler_params=pltpu.CompilerParams(dimension_semantics=("parallel",)),
    )(s2, x2, cstack, dt, wglu, bglu)


# ------------------------------ model glue ---------------------------------

def init_params(key, n_u, n_y, d_model, d_state, n_layers,
                rmin=0.0, rmax=1.0, max_phase=2 * math.pi):
    keys = jax.random.split(key, 2 + n_layers)

    def linear_init(k, fan_in, fan_out):
        k1, k2 = jax.random.split(k)
        bound = 1.0 / math.sqrt(fan_in)
        w = jax.random.uniform(k1, (fan_in, fan_out), minval=-bound, maxval=bound,
                               dtype=jnp.float32)
        b = jax.random.uniform(k2, (1, fan_out), minval=-bound, maxval=bound,
                               dtype=jnp.float32)
        return w, b

    enc_w, enc_b = linear_init(keys[0], n_u, d_model)
    dec_w, dec_b = linear_init(keys[1], d_model, n_y)

    blocks = []
    for l in range(n_layers):
        bk = jax.random.split(keys[2 + l], 8)
        # LRU initialization (ring distribution on eigenvalues)
        u1 = jax.random.uniform(bk[0], (d_state,), dtype=jnp.float32)
        u2 = jax.random.uniform(bk[1], (d_state,), dtype=jnp.float32)
        nu_log = jnp.log(-0.5 * jnp.log(u1 * (rmax + rmin) * (rmax - rmin) + rmin ** 2))
        theta = max_phase * u2            # = exp(log(max_phase*u2)), no log(0) NaN
        lam_mod = jnp.exp(-jnp.exp(nu_log))
        gamma = jnp.sqrt(jnp.maximum(1.0 - lam_mod ** 2, 0.0))
        lam_re = (lam_mod * jnp.cos(theta)).reshape(1, d_state).astype(jnp.float32)
        lam_im = (lam_mod * jnp.sin(theta)).reshape(1, d_state).astype(jnp.float32)

        B_re = jax.random.normal(bk[2], (d_state, d_model), jnp.float32) / math.sqrt(2 * d_model)
        B_im = jax.random.normal(bk[3], (d_state, d_model), jnp.float32) / math.sqrt(2 * d_model)
        C_re = jax.random.normal(bk[4], (d_model, d_state), jnp.float32) / math.sqrt(d_state)
        C_im = jax.random.normal(bk[5], (d_model, d_state), jnp.float32) / math.sqrt(d_state)
        D = jax.random.normal(bk[6], (d_model, d_model), jnp.float32) / math.sqrt(d_model)

        # fold gamma into B; fuse re/im weights into single wide matmul operands
        w_bu = jnp.concatenate([(gamma[:, None] * B_re).T,
                                (gamma[:, None] * B_im).T], axis=1)    # (D, 2*d_state)
        cstack = jnp.concatenate([C_re.T, -C_im.T], axis=0)            # (2*d_state, D)
        dt = D.T                                                       # (D, D)

        # GLU output linear (d_model -> 2*d_model), kept as ONE wide matrix
        wglu, bglu = linear_init(bk[7], d_model, 2 * d_model)

        blocks.append(dict(lam_re=lam_re, lam_im=lam_im, w_bu=w_bu,
                           cstack=cstack, dt=dt, wglu=wglu, bglu=bglu))

    return dict(enc_w=enc_w, enc_b=enc_b, dec_w=dec_w, dec_b=dec_b, blocks=blocks)


def dwn_forward(u, params, d_model):
    B, L, n_u = u.shape
    n_y = params["dec_w"].shape[1]

    # go time-major ONCE for the whole stack; everything position-independent
    # runs on the flat (L*B, D) view (free reshape of the row-major array)
    x2 = jnp.transpose(u, (1, 0, 2)).reshape(L * B, n_u)

    # encoder
    x2 = linear(x2, params["enc_w"], params["enc_b"])                  # (L*B, D)

    for blk in params["blocks"]:
        # (1) time-parallel input projection, re/im fused -> (L*B, 2*d_state)
        bu2 = matmul(x2, blk["w_bu"])
        two_n = bu2.shape[1]
        # (2) diagonal complex recurrence (elementwise only, time-blocked scan)
        s = lru_scan(bu2.reshape(L, B, two_n), blk["lam_re"], blk["lam_im"])
        # (3) fused readout + GLU feed-forward + residual
        x2 = lru_out_glu_resid(s.reshape(L * B, two_n), x2,
                               blk["cstack"], blk["dt"], blk["wglu"], blk["bglu"])

    # decoder, then back to batch-major once
    y2 = linear(x2, params["dec_w"], params["dec_b"])                  # (L*B, n_y)
    return jnp.transpose(y2.reshape(L, B, n_y), (1, 0, 2))


# --------------------------------- main -------------------------------------

if __name__ == "__main__":
    key = jax.random.PRNGKey(0)
    batch, seq = 2, 8
    n_u, n_y = 3, 2
    d_model, d_state, n_layers = 32, 64, 2

    params = init_params(key, n_u, n_y, d_model, d_state, n_layers)
    u = jax.random.normal(jax.random.fold_in(key, 123), (batch, seq, n_u),
                          dtype=jnp.float32)

    y = dwn_forward(u, params, d_model)
    y = jax.block_until_ready(y)
    assert y.shape == (batch, seq, n_y)
    assert bool(jnp.all(jnp.isfinite(y)))
    print("KERNEL_OK")
</pallas_src>

<mosaic_0001>
module attributes {stable_mosaic.version = 11 : i64} {
  func.func @_linear_kernel(%arg0: i32, %arg1: memref<16x3xf32, #tpu.memory_space<vmem>>, %arg2: memref<3x32xf32, #tpu.memory_space<vmem>>, %arg3: memref<1x32xf32, #tpu.memory_space<vmem>>, %arg4: memref<16x32xf32, #tpu.memory_space<vmem>>) attributes {dimension_semantics = [#tpu.dimension_semantics<parallel>], iteration_bounds = array<i64: 1>, scalar_prefetch = 0 : i64, scratch_operands = 0 : i64, tpu.core_type = #tpu.core_type<tc>, window_params = [{transform_indices = @transform_0, window_bounds = array<i64: 16, 3>}, {pipeline_mode = #tpu.pipeline_mode<synchronous>, transform_indices = @transform_1, window_bounds = array<i64: 3, 32>}, {pipeline_mode = #tpu.pipeline_mode<synchronous>, transform_indices = @transform_2, window_bounds = array<i64: 1, 32>}, {transform_indices = @transform_3, window_bounds = array<i64: 16, 32>}]} {
    %c0 = arith.constant 0 : index
    %c0_0 = arith.constant 0 : index
    %0 = vector.load %arg1[%c0, %c0_0] : memref<16x3xf32, #tpu.memory_space<vmem>>, vector<16x3xf32>
    %c0_1 = arith.constant 0 : index
    %c0_2 = arith.constant 0 : index
    %1 = vector.load %arg2[%c0_1, %c0_2] : memref<3x32xf32, #tpu.memory_space<vmem>>, vector<3x32xf32>
    %cst = arith.constant dense<0.000000e+00> : vector<16x32xf32>
    %2 = tpu.matmul %0, %1, %cst {dimension_numbers = #tpu.dot_dimension_numbers<[1], [0], [0], [1], [0, 0, 1, 1], [], []>} : vector<16x3xf32>, vector<3x32xf32>, vector<16x32xf32> -> vector<16x32xf32>
    %c0_3 = arith.constant 0 : index
    %c0_4 = arith.constant 0 : index
    %3 = vector.load %arg3[%c0_3, %c0_4] : memref<1x32xf32, #tpu.memory_space<vmem>>, vector<1x32xf32>
    %4 = vector.broadcast %3 : vector<1x32xf32> to vector<16x32xf32>
    %5 = arith.addf %2, %4 : vector<16x32xf32>
    %c0_5 = arith.constant 0 : index
    %c0_6 = arith.constant 0 : index
    %6 = vector.load %arg4[%c0_5, %c0_6] : memref<16x32xf32, #tpu.memory_space<vmem>>, vector<16x32xf32>
    tpu.vector_store %arg4[%c0_5, %c0_6], %5 {strides = array<i32>} : memref<16x32xf32, #tpu.memory_space<vmem>>, vector<16x32xf32>,
    return
  }
  func.func @transform_0(%arg0: i32) -> (i32, i32) {
    %c0_i32 = arith.constant 0 : i32
    %c0_i32_0 = arith.constant 0 : i32
    return %arg0, %c0_i32 : i32, i32
  }
  func.func @transform_1(%arg0: i32) -> (i32, i32) {
    %c0_i32 = arith.constant 0 : i32
    %c0_i32_0 = arith.constant 0 : i32
    %c0_i32_1 = arith.constant 0 : i32
    return %c0_i32, %c0_i32_0 : i32, i32
  }
  func.func @transform_2(%arg0: i32) -> (i32, i32) {
    %c0_i32 = arith.constant 0 : i32
    %c0_i32_0 = arith.constant 0 : i32
    %c0_i32_1 = arith.constant 0 : i32
    return %c0_i32, %c0_i32_0 : i32, i32
  }
  func.func @transform_3(%arg0: i32) -> (i32, i32) {
    %c0_i32 = arith.constant 0 : i32
    %c0_i32_0 = arith.constant 0 : i32
    return %arg0, %c0_i32 : i32, i32
  }
}

</mosaic_0001>

<bundles_post_ra>
// kernel: tpu_custom_call.1
= control target key start
LH: loop header
LB: loop body
LE: loop exit
PB: predicated region body
PF: predicated region fallthrough
CT: control target
= control target key end

     0   :  { %vm32_vm0 = vcmask 1042432   ;;  %vm25_vm1 = vcmask 23552   ;;  %s216_s0 = inlined_call_operand.vmem [shape: f32[16,3], index: 0, kind: input, shape index: {}]   ;;  %s217_s1 = inlined_call_operand.vmem [shape: f32[3,32], index: 1, kind: input, shape index: {}]   ;;  %s218_s2 = inlined_call_operand.vmem [shape: f32[1,32], index: 2, kind: input, shape index: {}]   ;;  %s219_s3 = inlined_call_operand.hbm [shape: f32[16,32], index: 3, kind: output, shape index: {}]  }
   0x1   :  { %v17_v0 = vld [vmem:[%s217_s1] sm:$0x7]  ;;  %v16_v2 = vld [vmem:[%s216_s0 + $0x8] sm:$0xff] }
   0x2   :  { %v15_v1 = vld [vmem:[%s216_s0] sm:$0xff]  ;;  %137 = vmatprep.subr.msk.mxu0 %vm32_vm0, %v17_v0 }
   0x3   :  { %139 = vmatprep.mubr.msk.f32.mxu0 %vm25_vm1, %v15_v1 }
   0x4   :  { %8 = vsyncpa [#allocation3], 0  ;;  %138 = vmatpush3.msk.msra.mxu0 %vm32_vm0, %v17_v0  ;;  %v130_v3 = vld [vmem:[%s218_s2] ss:$0 sm:$0xff]  ;;  %s169_s1 = smov [#allocation2]   ;;  %vm111_vm2 = vcmask 261120  }
   0x5   :  { %140 = vmatmul.mubr.msk.f32.vlgmr.msra.gmra.mrb[0].mxu0 %vm25_vm1, %v16_v2  ;;  %s119_s20 = sshll.u32 %s169_s1, 4  ;;  %s120_s20 = int_to_ptr.vmem [resolvable:$true] %s119_s20 }
   0x6   :  { %s145_s0 = scalar_lea.vmem %s120_s20, 256  ;;  %p150_p1 = scmp.lt.s32.totalorder %s120_s20, %s120_s20 }
   0x7   :  { %p146_p0 = scmp.ne.s32.totalorder %s120_s20, %s145_s0  ;;  %p151_p2 = scmp.lt.s32.totalorder %s145_s0, %s145_s0 }
   0x9   :  { %p152_p3 = por %p151_p2, %p150_p1 }
   0xb   :  { %p153_p4 = pnand %p152_p3, %p146_p0 }
  0xd8   :  { %v141_v4 = vpop.f32.mrb[0].mxu0 }
  0xd9   :  { %v108_v5 = vadd.f32 %v141_v4, %v130_v3  ;;  %v102_v6 = vpop.f32.mrb[1].mxu0 }
  0xda   :  { %v103_v7 = vadd.f32 %v130_v3, %v102_v6 }
  0xdb   :  { %113 = vst.msk [vmem:[#allocation2 + $0x8] sm:$0xff] %vm111_vm2, %v108_v5 }
  0xdc   :  { %112 = vst.msk [vmem:[#allocation2] sm:$0xff] %vm111_vm2, %v103_v7 }
  0xdd   :  { %156 = shalt.err (!%p153_p4)
}
  0xde   :  { %s157_s2 = scalar_lea.hbm %s219_s3, 256 }
  0xdf   :  { %p158_p5 = scmp.ne.s32.totalorder %s219_s3, %s157_s2  ;;  %p161_p6 = scmp.lt.u32.totalorder %s157_s2, %s219_s3 }
  0xe1   :  { %p163_p7 = pnand %p161_p6, %p158_p5 }
  0xe3   :  { %166 = shalt.err (!%p163_p7)
}
  0xe4   :  { %s170_s27 = smov 128   ;;  %s171_s28 = smov 8  }
  0xe5   :  { %125 = dma.vmem_to_hbm [thread:$0]  %s120_s20, 256, %s219_s3, [#allocation3], %s170_s27, %s170_s27, %s171_s28  }
  0xe6   :  { %167 = dma.done.wait [#allocation3], 256  }
  0xe7   :  { %168 = vsyncadd [#allocation3], 4294967040 }
  0xe8   :  { %129 = vsyncpa [#allocation3], 1 }

</bundles_post_ra>
